<compile_context>
chip_gen: v6e
topology: v6e:2x2x1
jax: 0.10.0
libtpu: 0.0.40
codegen_flags: <defaults>
</compile_context>

<pallas_src>
import numpy as np
import jax
import jax.numpy as jnp
from jax import lax
from jax.experimental import pallas as pl
from jax.experimental.pallas import tpu as pltpu


# ----------------------------- Pallas kernel --------------------------------
def varnet_kernel(x_ref, k1_ref, k2_ref, c_ref, o_ref):
    # conv1 (as bf16 matmul, BN1 scale pre-folded into K1) + BN1 shift +
    # LeakyReLU(0.2).  Accumulation in f32 on the MXU.
    h1 = jnp.dot(x_ref[...], k1_ref[...], preferred_element_type=jnp.float32)
    h1 = h1 + c_ref[0:1, 0:h1.shape[-1]]
    a1 = jnp.maximum(h1, 0.2 * h1)                       # LeakyReLU: mul+max

    # conv2 (as bf16 matmul, BN2 scale pre-folded into K2) + BN2 shift +
    # LeakyReLU(0.2).  The shift row also sets the spare "bias lane" to 1.0.
    h2 = jnp.dot(a1.astype(k2_ref.dtype), k2_ref[...],
                 preferred_element_type=jnp.float32) + c_ref[1:2, :]
    a2 = jnp.maximum(h2, 0.2 * h2)

    # linear1 + Sigmoid: VPU multiply + XLU lane reduction (N=1 MXU pass
    # avoided); the linear bias rides in the bias lane of the weight row.
    logits = jnp.sum(a2 * c_ref[2:3, :], axis=-1, keepdims=True)   # (TB, 1) f32
    o_ref[...] = jax.nn.sigmoid(logits)                  # 4 B/row HBM writeback


# ------------------------------- glue (init-time only) ----------------------
def _round_up(n, m):
    return ((n + m - 1) // m) * m


def conv3x3_as_matrix(w, H, W):
    """Expand a (Cout, Cin, 3, 3) stride-1 pad-1 conv into a dense
    (Cin*H*W, Cout*H*W) matrix acting on channel-major flattened inputs."""
    w = np.asarray(w, dtype=np.float32)
    Cout, Cin, KH, KW = w.shape
    M = np.zeros((Cin * H * W, Cout * H * W), dtype=np.float32)
    for co in range(Cout):
        for ci in range(Cin):
            for kh in range(KH):
                for kw in range(KW):
                    val = w[co, ci, kh, kw]
                    for h in range(H):
                        ih = h + kh - 1
                        if not (0 <= ih < H):
                            continue
                        for wd in range(W):
                            iw = wd + kw - 1
                            if not (0 <= iw < W):
                                continue
                            M[ci * H * W + ih * W + iw,
                              co * H * W + h * W + wd] += val
    return M


def fold_bn(gamma, beta, mean, var, pixels, eps=1e-5):
    """Per-channel eval-mode BN -> per-column (C*pixels) scale & shift vectors."""
    scale = gamma / np.sqrt(var + eps)
    shift = beta - mean * scale
    return (np.repeat(scale, pixels).astype(np.float32),
            np.repeat(shift, pixels).astype(np.float32))


def init_varnet_params(channels=32, num_pixels=25, packnum=1, seed=42):
    pe = int(np.sqrt(num_pixels))
    c1 = channels // 8
    c2 = channels // 4
    key = jax.random.PRNGKey(seed)
    k_w1, k_w2, k_wl = jax.random.split(key, 3)

    w1 = 0.2 * np.asarray(jax.random.normal(k_w1, (c1, 1 * packnum, 3, 3)), np.float32)
    w2 = 0.2 * np.asarray(jax.random.normal(k_w2, (c2, c1, 3, 3)), np.float32)
    wl = 0.1 * np.asarray(jax.random.normal(k_wl, (c2 * num_pixels, 1)), np.float32)
    bl = np.array([0.03], dtype=np.float32)

    # Deterministic (non-trivial) BatchNorm eval-mode parameters.
    # TODO(synk): PyTorch default training-mode BN would use batch statistics;
    # eval-mode running stats are used here.
    g1 = (1.0 + 0.10 * np.arange(c1)).astype(np.float32)
    b1 = (0.05 * np.arange(c1) - 0.10).astype(np.float32)
    m1 = (0.02 * np.arange(c1)).astype(np.float32)
    v1 = (1.0 + 0.05 * np.arange(c1)).astype(np.float32)

    g2 = (1.0 - 0.03 * np.arange(c2)).astype(np.float32)
    b2 = (0.02 * np.arange(c2)).astype(np.float32)
    m2 = (-0.01 * np.arange(c2)).astype(np.float32)
    v2 = (1.0 + 0.02 * np.arange(c2)).astype(np.float32)

    # ---- hoist all glue to init: conv->matmul, BN fold, padding, packing ----
    in_dim = packnum * num_pixels            # 25
    n1 = c1 * num_pixels                     # 100
    n2 = c2 * num_pixels                     # 200

    K1 = conv3x3_as_matrix(w1, pe, pe)       # (25, 100)
    K2 = conv3x3_as_matrix(w2, pe, pe)       # (100, 200)
    s1, sh1 = fold_bn(g1, b1, m1, v1, num_pixels)
    s2, sh2 = fold_bn(g2, b2, m2, v2, num_pixels)
    K1s = K1 * s1[None, :]                   # BN1 scale folded into columns
    K2s = K2 * s2[None, :]                   # BN2 scale folded into columns

    in_pad = _round_up(in_dim, 8)            # 32   (sublane-aligned K dim)
    n1_pad = _round_up(n1, 128)              # 128  (lane-aligned)
    n2_pad = _round_up(n2 + 1, 128)          # 256  (+1 spare lane for the bias)

    K1p = np.zeros((in_pad, n1_pad), np.float32)
    K1p[:in_dim, :n1] = K1s
    K2p = np.zeros((n1_pad, n2_pad), np.float32)
    K2p[:n1, :n2] = K2s

    # One packed f32 constants buffer (8, n2_pad):
    #   row 0: BN1 shift (first n1 lanes)
    #   row 1: BN2 shift, plus 1.0 at the bias lane (index n2)
    #   row 2: linear weight row, plus linear bias at the bias lane
    consts = np.zeros((8, n2_pad), np.float32)
    consts[0, :n1] = sh1
    consts[1, :n2] = sh2
    consts[1, n2] = 1.0
    consts[2, :n2] = wl[:, 0]
    consts[2, n2] = bl[0]

    return dict(pe=pe, num_pixels=num_pixels, packnum=packnum,
                # raw params (used by the pure-JAX reference)
                w1=w1, g1=g1, b1=b1, m1=m1, v1=v1,
                w2=w2, g2=g2, b2=b2, m2=m2, v2=v2,
                wl=wl, bl=bl,
                # device-ready kernel operands (weights as bf16 MXU inputs)
                K1=jnp.asarray(K1p, jnp.bfloat16),
                K2=jnp.asarray(K2p, jnp.bfloat16),
                consts=jnp.asarray(consts))


# ------------------------------- forward -------------------------------------
@jax.jit
def _varnet_pallas_forward(K1, K2, consts, x_flat):
    B, in_dim = x_flat.shape
    in_pad, n1_pad = K1.shape
    n2_pad = K2.shape[1]

    # Batch tile: big enough to amortize the ~0.35 us/step overhead, small
    # enough that double-buffered tiles + f32 intermediates stay well under
    # v5e's 16 MiB scoped-VMEM default (and v7x's 64 MiB physical VMEM).
    TB = min(1024, _round_up(B, 16))
    B_pad = _round_up(B, TB)
    grid = (B_pad // TB,)

    # Host-side pad (batch -> multiple of TB, lanes 25 -> 32) fused into a
    # single bf16 pass.  NOTE(perf): for very large B this is one extra
    # x-sized HBM round trip; it could be removed by masking a ragged tail
    # tile in-kernel, but it is small next to the per-row matmul work.
    x_pad = (jnp.zeros((B_pad, in_pad), K1.dtype)
             .at[:B, :in_dim].set(x_flat.astype(K1.dtype)))

    flops = 2 * B_pad * (in_pad * n1_pad + n1_pad * n2_pad + n2_pad)
    bytes_acc = (x_pad.size * 2 + K1.size * 2 + K2.size * 2
                 + consts.size * 4 + B_pad * 4)

    out = pl.pallas_call(
        varnet_kernel,
        grid=grid,
        in_specs=[
            pl.BlockSpec((TB, in_pad), lambda i: (i, 0)),      # batch tile
            pl.BlockSpec((in_pad, n1_pad), lambda i: (0, 0)),  # resident weights
            pl.BlockSpec((n1_pad, n2_pad), lambda i: (0, 0)),  # resident weights
            pl.BlockSpec((8, n2_pad), lambda i: (0, 0)),       # resident consts
        ],
        out_specs=pl.BlockSpec((TB, 1), lambda i: (i, 0)),     # 4 B/row output
        out_shape=jax.ShapeDtypeStruct((B_pad, 1), jnp.float32),
        compiler_params=pltpu.CompilerParams(
            dimension_semantics=("parallel",)),                # v7x: 2 TCs
        cost_estimate=pl.CostEstimate(flops=flops, transcendentals=B_pad,
                                      bytes_accessed=bytes_acc),
    )(x_pad, K1, K2, consts)
    return out[:B, :]


def varnet_forward(params, x, y):
    """Pallas implementation of VARNET.forward(x, y). `y` is unused, exactly as
    in the reference module (num_condition is forced to 0 in __init__)."""
    del y
    x_flat = jnp.asarray(x, jnp.float32).reshape(x.shape[0], -1)
    return _varnet_pallas_forward(params["K1"], params["K2"], params["consts"], x_flat)


# --------------------------- pure-JAX reference ------------------------------
def varnet_reference(params, x, y):
    del y
    pe = params["pe"]
    B = x.shape[0]
    xr = jnp.asarray(x, jnp.float32).reshape(B, params["packnum"], pe, pe)

    def bn_lrelu(h, g, b, m, v):
        s = g / jnp.sqrt(v + 1e-5)
        h = h * s[None, :, None, None] + (b - m * s)[None, :, None, None]
        return jnp.where(h > 0, h, 0.2 * h)

    h1 = lax.conv_general_dilated(xr, jnp.asarray(params["w1"]), (1, 1), "SAME",
                                  dimension_numbers=("NCHW", "OIHW", "NCHW"))
    a1 = bn_lrelu(h1, *(jnp.asarray(params[k]) for k in ("g1", "b1", "m1", "v1")))
    h2 = lax.conv_general_dilated(a1, jnp.asarray(params["w2"]), (1, 1), "SAME",
                                  dimension_numbers=("NCHW", "OIHW", "NCHW"))
    a2 = bn_lrelu(h2, *(jnp.asarray(params[k]) for k in ("g2", "b2", "m2", "v2")))
    flat = a2.reshape(B, -1)
    return jax.nn.sigmoid(flat @ jnp.asarray(params["wl"]) + jnp.asarray(params["bl"])[None, :])


if __name__ == "__main__":
    # Module config: channels=32, num_pixels=25 (pixels_edge=5 so the Linear
    # in_features C//4*5*5 matches), Packnum=1, Minibatch=False.
    channels, num_pixels, packnum, B = 32, 25, 1, 2
    params = init_varnet_params(channels, num_pixels, packnum, seed=42)

    key = jax.random.PRNGKey(0)
    kx, ky = jax.random.split(key)
    x = jax.random.normal(kx, (B, num_pixels), dtype=jnp.float32)  # flattened 5x5 images
    y = jax.random.normal(ky, (B, 1), dtype=jnp.float32)           # unused condition

    out = varnet_forward(params, x, y)
    out = jax.block_until_ready(out)

    ref = jax.block_until_ready(varnet_reference(params, x, y))
    assert out.shape == (B, 1), out.shape
    # bf16 matmul inputs (f32 accumulate) -> relaxed tolerance vs the f32 reference.
    np.testing.assert_allclose(np.asarray(out), np.asarray(ref), rtol=2e-2, atol=2e-2)
    print("KERNEL_OK")
</pallas_src>

<mosaic_0001>
module attributes {stable_mosaic.version = 11 : i64} {
  func.func @varnet_kernel(%arg0: i32, %arg1: memref<16x32xbf16, #tpu.memory_space<vmem>>, %arg2: memref<32x128xbf16, #tpu.memory_space<vmem>>, %arg3: memref<128x256xbf16, #tpu.memory_space<vmem>>, %arg4: memref<8x256xf32, #tpu.memory_space<vmem>>, %arg5: memref<16x1xf32, #tpu.memory_space<vmem>>) attributes {dimension_semantics = [#tpu.dimension_semantics<parallel>], iteration_bounds = array<i64: 1>, scalar_prefetch = 0 : i64, scratch_operands = 0 : i64, tpu.core_type = #tpu.core_type<tc>, window_params = [{transform_indices = @transform_0, window_bounds = array<i64: 16, 32>}, {pipeline_mode = #tpu.pipeline_mode<synchronous>, transform_indices = @transform_1, window_bounds = array<i64: 32, 128>}, {pipeline_mode = #tpu.pipeline_mode<synchronous>, transform_indices = @transform_2, window_bounds = array<i64: 128, 256>}, {pipeline_mode = #tpu.pipeline_mode<synchronous>, transform_indices = @transform_3, window_bounds = array<i64: 8, 256>}, {transform_indices = @transform_4, window_bounds = array<i64: 16, 1>}]} {
    %c0 = arith.constant 0 : index
    %c0_0 = arith.constant 0 : index
    %0 = vector.load %arg1[%c0, %c0_0] : memref<16x32xbf16, #tpu.memory_space<vmem>>, vector<16x32xbf16>
    %c0_1 = arith.constant 0 : index
    %c0_2 = arith.constant 0 : index
    %1 = vector.load %arg2[%c0_1, %c0_2] : memref<32x128xbf16, #tpu.memory_space<vmem>>, vector<32x128xbf16>
    %cst = arith.constant dense<0.000000e+00> : vector<16x128xf32>
    %2 = tpu.matmul %0, %1, %cst {dimension_numbers = #tpu.dot_dimension_numbers<[1], [0], [0], [1], [0, 0, 1, 1], [], []>} : vector<16x32xbf16>, vector<32x128xbf16>, vector<16x128xf32> -> vector<16x128xf32>
    %c0_3 = arith.constant 0 : index
    %c0_4 = arith.constant 0 : index
    %3 = vector.load %arg4[%c0_3, %c0_4] : memref<8x256xf32, #tpu.memory_space<vmem>>, vector<1x128xf32>
    %4 = vector.broadcast %3 : vector<1x128xf32> to vector<16x128xf32>
    %5 = arith.addf %2, %4 : vector<16x128xf32>
    %cst_5 = arith.constant 2.000000e-01 : f32
    %6 = vector.broadcast %cst_5 : f32 to vector<16x128xf32>
    %7 = arith.mulf %6, %5 : vector<16x128xf32>
    %8 = arith.maximumf %5, %7 : vector<16x128xf32>
    %9 = arith.truncf %8 : vector<16x128xf32> to vector<16x128xbf16>
    %c0_6 = arith.constant 0 : index
    %c0_7 = arith.constant 0 : index
    %10 = vector.load %arg3[%c0_6, %c0_7] : memref<128x256xbf16, #tpu.memory_space<vmem>>, vector<128x256xbf16>
    %cst_8 = arith.constant dense<0.000000e+00> : vector<16x256xf32>
    %11 = tpu.matmul %9, %10, %cst_8 {dimension_numbers = #tpu.dot_dimension_numbers<[1], [0], [0], [1], [0, 0, 1, 1], [], []>} : vector<16x128xbf16>, vector<128x256xbf16>, vector<16x256xf32> -> vector<16x256xf32>
    %c1 = arith.constant 1 : index
    %c0_9 = arith.constant 0 : index
    %12 = vector.load %arg4[%c1, %c0_9] : memref<8x256xf32, #tpu.memory_space<vmem>>, vector<1x256xf32>
    %13 = vector.broadcast %12 : vector<1x256xf32> to vector<16x256xf32>
    %14 = arith.addf %11, %13 : vector<16x256xf32>
    %cst_10 = arith.constant 2.000000e-01 : f32
    %15 = vector.broadcast %cst_10 : f32 to vector<16x256xf32>
    %16 = arith.mulf %15, %14 : vector<16x256xf32>
    %17 = arith.maximumf %14, %16 : vector<16x256xf32>
    %c2 = arith.constant 2 : index
    %c0_11 = arith.constant 0 : index
    %18 = vector.load %arg4[%c2, %c0_11] : memref<8x256xf32, #tpu.memory_space<vmem>>, vector<1x256xf32>
    %19 = vector.broadcast %18 : vector<1x256xf32> to vector<16x256xf32>
    %20 = arith.mulf %17, %19 : vector<16x256xf32>
    %cst_12 = arith.constant dense<0.000000e+00> : vector<16xf32>
    %21 = vector.multi_reduction <add>, %20, %cst_12 [1] : vector<16x256xf32> to vector<16xf32>
    %22 = vector.shape_cast %21 : vector<16xf32> to vector<16x1xf32>
    %23 = arith.negf %22 : vector<16x1xf32>
    %24 = math.exp %23 : vector<16x1xf32>
    %cst_13 = arith.constant 1.000000e+00 : f32
    %25 = vector.broadcast %cst_13 : f32 to vector<16x1xf32>
    %26 = arith.addf %25, %24 : vector<16x1xf32>
    %27 = arith.divf %25, %26 : vector<16x1xf32>
    %c0_14 = arith.constant 0 : index
    %c0_15 = arith.constant 0 : index
    %28 = vector.load %arg5[%c0_14, %c0_15] : memref<16x1xf32, #tpu.memory_space<vmem>>, vector<16x1xf32>
    tpu.vector_store %arg5[%c0_14, %c0_15], %27 {strides = array<i32>} : memref<16x1xf32, #tpu.memory_space<vmem>>, vector<16x1xf32>,
    return
  }
  func.func @transform_0(%arg0: i32) -> (i32, i32) {
    %c0_i32 = arith.constant 0 : i32
    %c0_i32_0 = arith.constant 0 : i32
    return %arg0, %c0_i32 : i32, i32
  }
  func.func @transform_1(%arg0: i32) -> (i32, i32) {
    %c0_i32 = arith.constant 0 : i32
    %c0_i32_0 = arith.constant 0 : i32
    %c0_i32_1 = arith.constant 0 : i32
    return %c0_i32, %c0_i32_0 : i32, i32
  }
  func.func @transform_2(%arg0: i32) -> (i32, i32) {
    %c0_i32 = arith.constant 0 : i32
    %c0_i32_0 = arith.constant 0 : i32
    %c0_i32_1 = arith.constant 0 : i32
    return %c0_i32, %c0_i32_0 : i32, i32
  }
  func.func @transform_3(%arg0: i32) -> (i32, i32) {
    %c0_i32 = arith.constant 0 : i32
    %c0_i32_0 = arith.constant 0 : i32
    %c0_i32_1 = arith.constant 0 : i32
    return %c0_i32, %c0_i32_0 : i32, i32
  }
  func.func @transform_4(%arg0: i32) -> (i32, i32) {
    %c0_i32 = arith.constant 0 : i32
    %c0_i32_0 = arith.constant 0 : i32
    return %arg0, %c0_i32 : i32, i32
  }
}

</mosaic_0001>

<bundles_post_ra>
// kernel: _varnet_pallas_forward.1
= control target key start
LH: loop header
LB: loop body
LE: loop exit
PB: predicated region body
PF: predicated region fallthrough
CT: control target
= control target key end

     0   :  { %9 = vsyncpa [#allocation3], 0  ;;  %s505_s0 = inlined_call_operand.vmem [shape: bf16[16,32], index: 0, kind: input, shape index: {}]   ;;  %s506_s1 = inlined_call_operand.hbm [shape: bf16[32,128], index: 1, kind: input, shape index: {}]   ;;  %s507_s2 = inlined_call_operand.hbm [shape: bf16[128,256], index: 2, kind: input, shape index: {}]   ;;  %s508_s3 = inlined_call_operand.vmem [shape: f32[8,256], index: 3, kind: input, shape index: {}]   ;;  %s509_s4 = inlined_call_operand.vmem [shape: f32[16,1], index: 4, kind: output, shape index: {}]  }
   0x1   :  { %10 = vsyncpa [#allocation5], 0  ;;  %s447_s15 = smov [#allocation2]  }
   0x2   :  { %s18_s16 = sshll.u32 %s447_s15, 4  ;;  %s19_s16 = int_to_ptr.vmem [resolvable:$true] %s18_s16 }
   0x3   :  { %s411_s17 = scalar_lea.vmem %s19_s16, 256  ;;  %p416_p1 = scmp.lt.s32.totalorder %s19_s16, %s19_s16 }
   0x4   :  { %p412_p0 = scmp.ne.s32.totalorder %s19_s16, %s411_s17  ;;  %p417_p2 = scmp.lt.s32.totalorder %s411_s17, %s411_s17 }
   0x6   :  { %p418_p3 = por %p417_p2, %p416_p1 }
   0x8   :  { %p419_p4 = pnand %p418_p3, %p412_p0 }
   0xa   :  { %422 = shalt.err (!%p419_p4)
}
   0xb   :  { %s448_s18 = smov 64   ;;  %s449_s19 = smov 4  }
   0xc   :  { %24 = dma.hbm_to_vmem [thread:$0]  %s506_s1, 256, %s19_s16, [#allocation3], %s448_s18, %s448_s18, %s449_s19  }
   0xd   :  { %s450_s22 = smov [#allocation4]  }
   0xe   :  { %s30_s23 = sshll.u32 %s450_s22, 4  ;;  %s31_s23 = int_to_ptr.vmem [resolvable:$true] %s30_s23 }
   0xf   :  { %s431_s24 = scalar_lea.vmem %s31_s23, 2048  ;;  %p436_p6 = scmp.lt.s32.totalorder %s31_s23, %s31_s23 }
  0x10   :  { %p432_p5 = scmp.ne.s32.totalorder %s31_s23, %s431_s24  ;;  %p437_p7 = scmp.lt.s32.totalorder %s431_s24, %s431_s24 }
  0x12   :  { %p438_p8 = por %p437_p7, %p436_p6 }
  0x14   :  { %p439_p9 = pnand %p438_p8, %p432_p5 }
  0x16   :  { %442 = shalt.err (!%p439_p9)
}
  0x17   :  { %s451_s25 = smov 128   ;;  %s452_s26 = smov 8  }
  0x18   :  { %36 = dma.hbm_to_vmem [thread:$0]  %s507_s2, 2048, %s31_s23, [#allocation5], %s451_s25, %s451_s25, %s452_s26  }
  0x19   :  { %443 = dma.done.wait [#allocation3], 256  }
  0x1a   :  { %444 = vsyncadd [#allocation3], 4294967040 }
  0x1b   :  { %445 = dma.done.wait [#allocation5], 2048  }
  0x1c   :  { %446 = vsyncadd [#allocation5], 4294965248  ;;  %v453_v0 = vmov 0.0   ;;  %vm454_vm0 = vmmov 0   ;;  %v368_v1 = vld [vmem:[#allocation2 + $0x8] sm:$0xff]   ;;  %v369_v2 = vld [vmem:[#allocation2] sm:$0xff]   ;;  %v139_v33 = vlaneseq }
  0x1d   :  { %351 = vmatprep.subr.bf16.mxu0 %v453_v0  ;;  %355 = vmatprep.mubr.msk.bf16.mxu0 %vm454_vm0, %v453_v0  ;;  %v371_v3 = vld [vmem:[#allocation4 + $0x74] ss:$8 sps:$4 sm:$0xff]   ;;  %v373_v4 = vld [vmem:[#allocation4 + $0x70] ss:$8 sps:$4 sm:$0xff]   ;;  %v374_v6 = vld [vmem:[#allocation4 + $0x64] ss:$8 sps:$4 sm:$0xff]  }
  0x1e   :  { %352 = vmatpush3.bf16.msra.mxu0 %v368_v1  ;;  %v370_v5 = vld [vmem:[%s505_s0] sm:$0xff]   ;;  %229 = vmatprep.subr.bf16.mxu1 %v371_v3  ;;  %vm70_vm1 = vcmask 261120   ;;  %v376_v7 = vld [vmem:[#allocation4 + $0x60] ss:$8 sps:$4 sm:$0xff]   ;;  %v380_v10 = vld [vmem:[#allocation4 + $0x44] ss:$8 sps:$4 sm:$0xff]  }
  0x1f   :  { %353 = vmatprep.subr.bf16.mxu0 %v453_v0  ;;  %230 = vmatpush1.bf16.msra.mxu1 %v373_v4  ;;  %v377_v8 = vld [vmem:[#allocation4 + $0x54] ss:$8 sps:$4 sm:$0xff]   ;;  %v379_v9 = vld [vmem:[#allocation4 + $0x50] ss:$8 sps:$4 sm:$0xff]   ;;  %v382_v11 = vld [vmem:[#allocation4 + $0x40] ss:$8 sps:$4 sm:$0xff]  }
  0x20   :  { %231 = vmatprep.subr.bf16.mxu1 %v374_v6  ;;  %v383_v12 = vld [vmem:[#allocation4 + $0x34] ss:$8 sps:$4 sm:$0xff]   ;;  %v385_v13 = vld [vmem:[#allocation4 + $0x30] ss:$8 sps:$4 sm:$0xff]   ;;  %v386_v14 = vld [vmem:[#allocation4 + $0x24] ss:$8 sps:$4 sm:$0xff]  }
  0x21   :  { %v388_v15 = vld [vmem:[#allocation4 + $0x20] ss:$8 sps:$4 sm:$0xff]   ;;  %v389_v16 = vld [vmem:[#allocation4 + $0x14] ss:$8 sps:$4 sm:$0xff]   ;;  %v391_v17 = vld [vmem:[#allocation4 + $0x10] ss:$8 sps:$4 sm:$0xff]  }
  0x22   :  { %354 = vmatpush3.bf16.msra.mxu0 %v369_v2  ;;  %v392_v18 = vld [vmem:[#allocation4 + $0x4] ss:$8 sps:$4 sm:$0xff]   ;;  %v394_v19 = vld [vmem:[#allocation4] ss:$8 sps:$4 sm:$0xff]   ;;  %v455_v20 = vmov 0   ;;  %v140_v34 = vshrl.u32 %v139_v33, 7 }
  0x23   :  { %232 = vmatpush1.bf16.msra.mxu1 %v376_v7  ;;  %261 = vmatprep.mubr.bf16.mxu1 %v455_v20  ;;  %v52_v21 = vld [vmem:[%s508_s3] ss:$0 sm:$0xff]  ;;  %v328_v36 = vld [vmem:[%s508_s3 + $0x1] ss:$8 sm:$0x3]  ;;  %vm315_vm2 = vcmask 7168  }
  0x24   :  { %233 = vmatprep.subr.bf16.mxu1 %v377_v8  ;;  %v141_v35 = vsub.s32 0, %v140_v34  ;;  %v145_v37 = vsub.s32 1, %v140_v34  ;;  %v345_v42 = vld [vmem:[%s508_s3 + $0x2] ss:$8 sm:$0x3] }
  0x25   :  { %356 = vmatmul.mubr.msk.bf16.vlgmr.msra.gmra.mxu0 %vm70_vm1, %v370_v5 }
  0x26   :  { %v142_v38 = vrot.slane %v328_v36, %v141_v35  ;;  %v146_v39 = vrot.slane %v328_v36, %v145_v37  ;;  %v286_v47 = vrot.slane %v345_v42, %v141_v35  ;;  %v290_v51 = vrot.slane %v345_v42, %v145_v37 }
  0x27   :  { %234 = vmatpush1.bf16.msra.mxu1 %v379_v9 }
  0x28   :  { %235 = vmatprep.subr.bf16.mxu1 %v380_v10 }
  0x2b   :  { %236 = vmatpush1.bf16.msra.mxu1 %v382_v11 }
  0x2c   :  { %237 = vmatprep.subr.bf16.mxu1 %v383_v12 }
  0x2f   :  { %238 = vmatpush1.bf16.msra.mxu1 %v385_v13 }
  0x30   :  { %239 = vmatprep.subr.bf16.mxu1 %v386_v14 }
  0x33   :  { %240 = vmatpush1.bf16.msra.mxu1 %v388_v15 }
  0x34   :  { %241 = vmatprep.subr.bf16.mxu1 %v389_v16 }
  0x37   :  { %242 = vmatpush1.bf16.msra.mxu1 %v391_v17 }
  0x38   :  { %243 = vmatprep.subr.bf16.mxu1 %v392_v18 }
  0x3b   :  { %244 = vmatpush1.bf16.msra.mxu1 %v394_v19 }
  0xe5   :  { %v108_v22 = vpop.f32.mrf.mxu0 }
  0xe6   :  { %v109_v23 = vadd.f32 %v108_v22, %v52_v21 }
  0xe7   :  { %v357_v24 = vpop.f32.mrf.mxu0 }
  0xe8   :  { %v115_v26 = vmul.f32 0.2, %v109_v23 }
  0xe9   :  { %v111_v25 = vpop.f32.mrf.mxu0 }
  0xea   :  { %v112_v27 = vadd.f32 %v111_v25, %v52_v21  ;;  %v117_v30 = vmax.f32 %v109_v23, %v115_v26 }
  0xeb   :  { %v358_v28 = vpop.f32.mrf.mxu0 }
  0xec   :  { %v116_v29 = vmul.f32 0.2, %v112_v27 }
  0xee   :  { %v118_v31 = vmax.f32 %v112_v27, %v116_v29 }
  0xf0   :  { %v119_v32 = vpack.c.bf16 %v118_v31, %v117_v30 }
  0xf2   :  { %262 = vmatmul.mubr.bf16.vlgmr.msra.gmra.mxu1 %v119_v32 }
 0x1b2   :  { %v263_v40 = vpop.f32.mrf.mxu1 }
 0x1b3   :  { %v264_v41 = vadd.f32 %v263_v40, %v142_v38 }
 0x1b4   :  { %v265_v43 = vpop.f32.mrf.mxu1 }
 0x1b5   :  { %v272_v44 = vmul.f32 0.2, %v264_v41  ;;  %v266_v45 = vadd.f32 %v265_v43, %v146_v39 }
 0x1b6   :  { %v267_v46 = vpop.f32.mrf.mxu1 }
 0x1b7   :  { %v276_v48 = vmax.f32 %v264_v41, %v272_v44  ;;  %v273_v49 = vmul.f32 0.2, %v266_v45  ;;  %v268_v50 = vadd.f32 %v267_v46, %v142_v38 }
 0x1b8   :  { %v269_v52 = vpop.f32.mrf.mxu1 }
 0x1b9   :  { %v277_v53 = vmax.f32 %v266_v45, %v273_v49  ;;  %v274_v54 = vmul.f32 0.2, %v268_v50  ;;  %v270_v55 = vadd.f32 %v269_v52, %v146_v39  ;;  %v293_v58 = vmul.f32 %v286_v47, %v276_v48 }
 0x1bb   :  { %v278_v56 = vmax.f32 %v268_v50, %v274_v54  ;;  %v275_v57 = vmul.f32 0.2, %v270_v55  ;;  %v294_v59 = vmul.f32 %v290_v51, %v277_v53 }
 0x1bd   :  { %v279_v60 = vmax.f32 %v270_v55, %v275_v57  ;;  %v297_v61 = vadd.f32 %v294_v59, %v293_v58  ;;  %v295_v62 = vmul.f32 %v286_v47, %v278_v56 }
 0x1bf   :  { %298 = vadd.xlane.f32.xlu0 %v297_v61  ;;  %v296_v63 = vmul.f32 %v290_v51, %v279_v60 }
 0x1c1   :  { %v300_v0 = vadd.f32 %v296_v63, %v295_v62 }
 0x1c3   :  { %301 = vadd.xlane.f32.xlu0 %v300_v0 }
 0x248   :  { %v299_v1 = vpop.xlane.xlu0 %298 }
 0x249   :  { %v346_v2 = vmul.f32 -1.442695, %v299_v1 }
 0x24b   :  { %395 = vpow2.f32 %v346_v2 }
 0x24c   :  { %v302_v3 = vpop.xlane.xlu0 %301 }
 0x24d   :  { %v347_v4 = vmul.f32 -1.442695, %v302_v3 }
 0x24f   :  { %397 = vpow2.f32 %v347_v4 }
 0x258   :  { %v396_v5 = vpop.eup %395 }
 0x259   :  { %v309_v6 = vadd.f32 1.0, %v396_v5 }
 0x25b   :  { %399 = vrcp.f32 %v309_v6 }
 0x25c   :  { %v398_v7 = vpop.eup %397 }
 0x25d   :  { %v310_v8 = vadd.f32 1.0, %v398_v7 }
 0x25f   :  { %401 = vrcp.f32 %v310_v8 }
 0x268   :  { %v400_v9 = vpop.eup %399 }
 0x269   :  { %316 = vst.msk [vmem:[%s509_s4] sm:$0xff] %vm315_vm2, %v400_v9 }
 0x26c   :  { %v402_v10 = vpop.eup %401 }
 0x26d   :  { %317 = vst.msk [vmem:[%s509_s4 + $0x8] sm:$0xff] %vm315_vm2, %v402_v10 }
 0x26e   :  { %322 = vsyncpa [#allocation3], 1 }
 0x26f   :  { %323 = vsyncpa [#allocation5], 1 }

</bundles_post_ra>
